<compile_context>
chip_gen: v6e
topology: v6e:2x2x1
jax: 0.10.0
libtpu: 0.0.40
codegen_flags: <defaults>
</compile_context>

<pallas_src>
import math

import jax
import jax.numpy as jnp
from jax.experimental import pallas as pl
from jax.experimental.pallas import tpu as pltpu

LANE = 128  # hidden / output feature dims are padded to this


def _round_up(n, m):
    return ((n + m - 1) // m) * m


def _pad_to(a, shape):
    pads = [(0, t - s) for s, t in zip(a.shape, shape)]
    return jnp.pad(a, pads)


def _default_use_bf16():
    """bf16 MXU operands on every bf16-native MXU generation (v5e and newer)."""
    try:
        d = jax.devices()[0]
        if d.platform != "tpu":
            return False
        kind = d.device_kind.lower()
    except Exception:  # pragma: no cover - be conservative on exotic backends
        return False
    return not any(old in kind for old in ("v2", "v3", "v4"))


def dqn_kernel(x_ref, w_ref, b_ref, o_ref):
    """x_ref: (TB, S) f32; w_ref: (4,128,128) mm_dtype; b_ref: (4,1,128) f32;
    o_ref: (TB, 128) out dtype (bf16 on the default path)."""
    mm_dtype = w_ref.dtype
    s = x_ref.shape[1]                      # real state_size (static)

    # fc1: cast x in-kernel and contract over the real state_size rows of the
    # zero-padded fc1 weight (no wrapper-side pad/cast round trip).
    w1 = w_ref[0]
    h = jnp.dot(x_ref[...].astype(mm_dtype), w1[:s, :],
                preferred_element_type=jnp.float32)
    h = jnp.maximum(h + b_ref[0], 0.0)

    # fc2, fc3 (+ ReLU): lane-dense 128x128 matmuls, f32 accumulation.
    for layer in (1, 2):
        h = jnp.dot(h.astype(mm_dtype), w_ref[layer],
                    preferred_element_type=jnp.float32)
        h = jnp.maximum(h + b_ref[layer], 0.0)

    # fc4 (no activation); padded output columns stay exact zeros (zero weight
    # columns + zero bias).  Cast in the epilogue to halve writeback bytes.
    out = jnp.dot(h.astype(mm_dtype), w_ref[3],
                  preferred_element_type=jnp.float32)
    o_ref[...] = (out + b_ref[3]).astype(o_ref.dtype)


def dqn_forward(x, params, *, block_b=1024, use_bf16=None, return_padded=False):
    """x: [B, state_size] float32. params: list of (w_t [in,out], b [1,out]).

    Returns [B, action_size] Q-values (bf16 on the default v5e/v6e/v7x path,
    f32 when use_bf16=False).  With return_padded=True the raw lane-dense
    (b_pad, 128) slab is returned so downstream ops can consume it without the
    extra slice pass over HBM.
    """
    (w1, b1), (w2, b2), (w3, b3), (w4, b4) = params
    B, state_size = x.shape
    action_size = w4.shape[1]
    assert state_size <= LANE and action_size <= LANE, (
        "this fused kernel assumes state/action dims fit in one 128-lane tile")

    if use_bf16 is None:
        use_bf16 = _default_use_bf16()
    mm_dtype = jnp.bfloat16 if use_bf16 else jnp.float32

    # Zero-pad every weight to [128, 128] (in, out) and stack -> one DMA,
    # resident in VMEM for the whole grid.
    w_stack = jnp.stack([
        _pad_to(w1, (LANE, LANE)),
        _pad_to(w2, (LANE, LANE)),
        _pad_to(w3, (LANE, LANE)),
        _pad_to(w4, (LANE, LANE)),
    ]).astype(mm_dtype)                                   # [4, 128, 128]
    b_stack = jnp.stack([
        _pad_to(b1, (1, LANE)),
        _pad_to(b2, (1, LANE)),
        _pad_to(b3, (1, LANE)),
        _pad_to(b4, (1, LANE)),
    ]).astype(jnp.float32)                                # [4, 1, 128]

    # Batch tiling: big tiles (kernel is HBM/overhead-bound), but aim for at
    # least 2 tiles when the batch allows it so v7x's two TensorCores both get
    # work.  Tiles never drop below the 8-sublane minimum.
    b_pad8 = _round_up(B, 8)
    tb = min(block_b, max(8, _round_up(pl.cdiv(b_pad8, 2), 8)))
    b_pad = _round_up(b_pad8, tb)

    # Only the batch dim is padded (and only if needed); the feature dim is
    # handled inside the kernel, so no (b_pad, 128) round trip through HBM.
    x_in = x if b_pad == B else jnp.pad(x, ((0, b_pad - B), (0, 0)))

    out = pl.pallas_call(
        dqn_kernel,
        out_shape=jax.ShapeDtypeStruct((b_pad, LANE), mm_dtype),
        grid=(b_pad // tb,),
        in_specs=[
            pl.BlockSpec((tb, state_size), lambda i: (i, 0)),    # x tile (full feature dim)
            pl.BlockSpec((4, LANE, LANE), lambda i: (0, 0, 0)),  # weights (resident)
            pl.BlockSpec((4, 1, LANE), lambda i: (0, 0, 0)),     # biases (resident)
        ],
        out_specs=pl.BlockSpec((tb, LANE), lambda i: (i, 0)),
        compiler_params=pltpu.CompilerParams(
            dimension_semantics=("parallel",)),
    )(x_in, w_stack, b_stack)

    if return_padded:
        return out
    # Slice back to the real batch / action dims.
    return out[:B, :action_size]


def init_noisy_linear(key, in_features, out_features, sigma_init=0.017,
                      training=True):
    """Deterministic init mirroring NoisyLinear.reset_parameters/reset_noise.

    Returns the *effective* (weight, bias) used in forward():
      training: weight = mu + sigma * eps ;  bias = mu_b + sigma_b * eps_b
    Weight is returned transposed to [in, out] for the kernel; bias as [1, out].
    """
    k_wmu, k_bmu, k_weps, k_beps = jax.random.split(key, 4)
    mu_range = 1.0 / math.sqrt(in_features)

    weight_mu = jax.random.uniform(k_wmu, (out_features, in_features),
                                   jnp.float32, -mu_range, mu_range)
    bias_mu = jax.random.uniform(k_bmu, (out_features,),
                                 jnp.float32, -mu_range, mu_range)
    weight_sigma = jnp.full((out_features, in_features), sigma_init, jnp.float32)
    bias_sigma = jnp.full((out_features,), sigma_init, jnp.float32)
    weight_eps = jax.random.normal(k_weps, (out_features, in_features), jnp.float32)
    bias_eps = jax.random.normal(k_beps, (out_features,), jnp.float32)

    if training:
        weight = weight_mu + weight_sigma * weight_eps
        bias = bias_mu + bias_sigma * bias_eps
    else:
        weight = weight_mu
        bias = bias_mu

    # Transpose to [in, out] so kernel computes x @ W ; bias as [1, out].
    return weight.T, bias.reshape(1, out_features)


def init_dqn_params(key, state_size, action_size, training=True):
    keys = jax.random.split(key, 4)
    dims = [(state_size, 128), (128, 128), (128, 64), (64, action_size)]
    return [init_noisy_linear(k, i, o, training=training)
            for k, (i, o) in zip(keys, dims)]


def dqn_reference(x, params):
    """Pure-JAX reference for correctness check."""
    h = x
    for i, (w, b) in enumerate(params):
        h = h @ w + b
        if i < len(params) - 1:
            h = jnp.maximum(h, 0.0)
    return h


if __name__ == "__main__":
    key = jax.random.PRNGKey(0)
    k_params, k_x, k_x2 = jax.random.split(key, 3)

    batch = 8
    state_size = 16
    action_size = 4

    params = init_dqn_params(k_params, state_size, action_size, training=True)
    x = jax.random.normal(k_x, (batch, state_size), jnp.float32)
    ref = dqn_reference(x, params)

    # 1) Strict numerics check: force f32 matmul operands (and f32 output).
    out_f32 = jax.block_until_ready(dqn_forward(x, params, use_bf16=False))
    assert out_f32.shape == (batch, action_size)
    assert jnp.allclose(out_f32, ref, atol=1e-4, rtol=1e-4), "f32 mismatch vs reference"

    # 2) Device-default path (bf16 operands/output on v5e and newer).
    out_dev = jax.block_until_ready(dqn_forward(x, params))
    assert out_dev.shape == (batch, action_size)
    tol = (5e-2, 5e-2) if _default_use_bf16() else (1e-4, 1e-4)
    assert jnp.allclose(out_dev.astype(jnp.float32), ref,
                        atol=tol[0], rtol=tol[1]), "mismatch vs reference"

    # 3) Ragged batch to exercise batch padding / multi-tile grid path.
    x2 = jax.random.normal(k_x2, (20, state_size), jnp.float32)
    out2 = jax.block_until_ready(dqn_forward(x2, params, use_bf16=False))
    ref2 = dqn_reference(x2, params)
    assert out2.shape == (20, action_size)
    assert jnp.allclose(out2, ref2, atol=1e-4, rtol=1e-4), "padded-batch mismatch"

    print("KERNEL_OK")
</pallas_src>

<mosaic_0001>
module attributes {stable_mosaic.version = 11 : i64} {
  func.func @dqn_kernel(%arg0: i32, %arg1: memref<8x16xf32, #tpu.memory_space<vmem>>, %arg2: memref<4x128x128xf32, #tpu.memory_space<vmem>>, %arg3: memref<4x1x128xf32, #tpu.memory_space<vmem>>, %arg4: memref<8x128xf32, #tpu.memory_space<vmem>>) attributes {dimension_semantics = [#tpu.dimension_semantics<parallel>], iteration_bounds = array<i64: 1>, scalar_prefetch = 0 : i64, scratch_operands = 0 : i64, tpu.core_type = #tpu.core_type<tc>, window_params = [{transform_indices = @transform_0, window_bounds = array<i64: 8, 16>}, {pipeline_mode = #tpu.pipeline_mode<synchronous>, transform_indices = @transform_1, window_bounds = array<i64: 4, 128, 128>}, {pipeline_mode = #tpu.pipeline_mode<synchronous>, transform_indices = @transform_2, window_bounds = array<i64: 4, 1, 128>}, {transform_indices = @transform_3, window_bounds = array<i64: 8, 128>}]} {
    %c0 = arith.constant 0 : index
    %c0_0 = arith.constant 0 : index
    %c0_1 = arith.constant 0 : index
    %0 = vector.load %arg2[%c0, %c0_0, %c0_1] : memref<4x128x128xf32, #tpu.memory_space<vmem>>, vector<1x128x128xf32>
    %1 = vector.shape_cast %0 : vector<1x128x128xf32> to vector<128x128xf32>
    %c0_2 = arith.constant 0 : index
    %c0_3 = arith.constant 0 : index
    %2 = vector.load %arg1[%c0_2, %c0_3] : memref<8x16xf32, #tpu.memory_space<vmem>>, vector<8x16xf32>
    %3 = vector.extract_strided_slice %1 {offsets = [0, 0], sizes = [16, 128], strides = [1, 1]} : vector<128x128xf32> to vector<16x128xf32>
    %cst = arith.constant dense<0.000000e+00> : vector<8x128xf32>
    %4 = tpu.matmul %2, %3, %cst {dimension_numbers = #tpu.dot_dimension_numbers<[1], [0], [0], [1], [0, 0, 1, 1], [], []>} : vector<8x16xf32>, vector<16x128xf32>, vector<8x128xf32> -> vector<8x128xf32>
    %c0_4 = arith.constant 0 : index
    %c0_5 = arith.constant 0 : index
    %c0_6 = arith.constant 0 : index
    %5 = vector.load %arg3[%c0_4, %c0_5, %c0_6] : memref<4x1x128xf32, #tpu.memory_space<vmem>>, vector<1x1x128xf32>
    %6 = vector.shape_cast %5 : vector<1x1x128xf32> to vector<1x128xf32>
    %7 = vector.broadcast %6 : vector<1x128xf32> to vector<8x128xf32>
    %8 = arith.addf %4, %7 : vector<8x128xf32>
    %cst_7 = arith.constant 0.000000e+00 : f32
    %9 = vector.broadcast %cst_7 : f32 to vector<8x128xf32>
    %10 = arith.maximumf %8, %9 : vector<8x128xf32>
    %c1 = arith.constant 1 : index
    %c0_8 = arith.constant 0 : index
    %c0_9 = arith.constant 0 : index
    %11 = vector.load %arg2[%c1, %c0_8, %c0_9] : memref<4x128x128xf32, #tpu.memory_space<vmem>>, vector<1x128x128xf32>
    %12 = vector.shape_cast %11 : vector<1x128x128xf32> to vector<128x128xf32>
    %cst_10 = arith.constant dense<0.000000e+00> : vector<8x128xf32>
    %13 = tpu.matmul %10, %12, %cst_10 {dimension_numbers = #tpu.dot_dimension_numbers<[1], [0], [0], [1], [0, 0, 1, 1], [], []>} : vector<8x128xf32>, vector<128x128xf32>, vector<8x128xf32> -> vector<8x128xf32>
    %c1_11 = arith.constant 1 : index
    %c0_12 = arith.constant 0 : index
    %c0_13 = arith.constant 0 : index
    %14 = vector.load %arg3[%c1_11, %c0_12, %c0_13] : memref<4x1x128xf32, #tpu.memory_space<vmem>>, vector<1x1x128xf32>
    %15 = vector.shape_cast %14 : vector<1x1x128xf32> to vector<1x128xf32>
    %16 = vector.broadcast %15 : vector<1x128xf32> to vector<8x128xf32>
    %17 = arith.addf %13, %16 : vector<8x128xf32>
    %cst_14 = arith.constant 0.000000e+00 : f32
    %18 = vector.broadcast %cst_14 : f32 to vector<8x128xf32>
    %19 = arith.maximumf %17, %18 : vector<8x128xf32>
    %c2 = arith.constant 2 : index
    %c0_15 = arith.constant 0 : index
    %c0_16 = arith.constant 0 : index
    %20 = vector.load %arg2[%c2, %c0_15, %c0_16] : memref<4x128x128xf32, #tpu.memory_space<vmem>>, vector<1x128x128xf32>
    %21 = vector.shape_cast %20 : vector<1x128x128xf32> to vector<128x128xf32>
    %cst_17 = arith.constant dense<0.000000e+00> : vector<8x128xf32>
    %22 = tpu.matmul %19, %21, %cst_17 {dimension_numbers = #tpu.dot_dimension_numbers<[1], [0], [0], [1], [0, 0, 1, 1], [], []>} : vector<8x128xf32>, vector<128x128xf32>, vector<8x128xf32> -> vector<8x128xf32>
    %c2_18 = arith.constant 2 : index
    %c0_19 = arith.constant 0 : index
    %c0_20 = arith.constant 0 : index
    %23 = vector.load %arg3[%c2_18, %c0_19, %c0_20] : memref<4x1x128xf32, #tpu.memory_space<vmem>>, vector<1x1x128xf32>
    %24 = vector.shape_cast %23 : vector<1x1x128xf32> to vector<1x128xf32>
    %25 = vector.broadcast %24 : vector<1x128xf32> to vector<8x128xf32>
    %26 = arith.addf %22, %25 : vector<8x128xf32>
    %cst_21 = arith.constant 0.000000e+00 : f32
    %27 = vector.broadcast %cst_21 : f32 to vector<8x128xf32>
    %28 = arith.maximumf %26, %27 : vector<8x128xf32>
    %c3 = arith.constant 3 : index
    %c0_22 = arith.constant 0 : index
    %c0_23 = arith.constant 0 : index
    %29 = vector.load %arg2[%c3, %c0_22, %c0_23] : memref<4x128x128xf32, #tpu.memory_space<vmem>>, vector<1x128x128xf32>
    %30 = vector.shape_cast %29 : vector<1x128x128xf32> to vector<128x128xf32>
    %cst_24 = arith.constant dense<0.000000e+00> : vector<8x128xf32>
    %31 = tpu.matmul %28, %30, %cst_24 {dimension_numbers = #tpu.dot_dimension_numbers<[1], [0], [0], [1], [0, 0, 1, 1], [], []>} : vector<8x128xf32>, vector<128x128xf32>, vector<8x128xf32> -> vector<8x128xf32>
    %c3_25 = arith.constant 3 : index
    %c0_26 = arith.constant 0 : index
    %c0_27 = arith.constant 0 : index
    %32 = vector.load %arg3[%c3_25, %c0_26, %c0_27] : memref<4x1x128xf32, #tpu.memory_space<vmem>>, vector<1x1x128xf32>
    %33 = vector.shape_cast %32 : vector<1x1x128xf32> to vector<1x128xf32>
    %34 = vector.broadcast %33 : vector<1x128xf32> to vector<8x128xf32>
    %35 = arith.addf %31, %34 : vector<8x128xf32>
    %c0_28 = arith.constant 0 : index
    %c0_29 = arith.constant 0 : index
    %36 = vector.load %arg4[%c0_28, %c0_29] : memref<8x128xf32, #tpu.memory_space<vmem>>, vector<8x128xf32>
    tpu.vector_store %arg4[%c0_28, %c0_29], %35 {strides = array<i32>} : memref<8x128xf32, #tpu.memory_space<vmem>>, vector<8x128xf32>,
    return
  }
  func.func @transform_0(%arg0: i32) -> (i32, i32) {
    %c0_i32 = arith.constant 0 : i32
    %c0_i32_0 = arith.constant 0 : i32
    return %arg0, %c0_i32 : i32, i32
  }
  func.func @transform_1(%arg0: i32) -> (i32, i32, i32) {
    %c0_i32 = arith.constant 0 : i32
    %c0_i32_0 = arith.constant 0 : i32
    %c0_i32_1 = arith.constant 0 : i32
    %c0_i32_2 = arith.constant 0 : i32
    return %c0_i32, %c0_i32_0, %c0_i32_1 : i32, i32, i32
  }
  func.func @transform_2(%arg0: i32) -> (i32, i32, i32) {
    %c0_i32 = arith.constant 0 : i32
    %c0_i32_0 = arith.constant 0 : i32
    %c0_i32_1 = arith.constant 0 : i32
    %c0_i32_2 = arith.constant 0 : i32
    return %c0_i32, %c0_i32_0, %c0_i32_1 : i32, i32, i32
  }
  func.func @transform_3(%arg0: i32) -> (i32, i32) {
    %c0_i32 = arith.constant 0 : i32
    %c0_i32_0 = arith.constant 0 : i32
    return %arg0, %c0_i32 : i32, i32
  }
}

</mosaic_0001>

<bundles_post_ra>
// kernel: tpu_custom_call.1
= control target key start
LH: loop header
LB: loop body
LE: loop exit
PB: predicated region body
PF: predicated region fallthrough
CT: control target
= control target key end

     0   :  { %8 = vsyncpa [#allocation3], 0  ;;  %s810_s0 = inlined_call_operand.hbm [shape: f32[8,16], index: 0, kind: input, shape index: {}]   ;;  %s811_s1 = inlined_call_operand.hbm [shape: f32[4,128,128], index: 1, kind: input, shape index: {}]   ;;  %s812_s2 = inlined_call_operand.hbm [shape: f32[4,1,128], index: 2, kind: input, shape index: {}]   ;;  %s813_s3 = inlined_call_operand.hbm [shape: f32[8,128], index: 3, kind: output, shape index: {}]  }
   0x1   :  { %9 = vsyncpa [#allocation6], 0 }
   0x2   :  { %10 = vsyncpa [#allocation4], 0  ;;  %s710_s12 = smov [#allocation5]  }
   0x3   :  { %s26_s13 = sshll.u32 %s710_s12, 4  ;;  %s27_s13 = int_to_ptr.vmem [resolvable:$true] %s26_s13 }
   0x4   :  { %s632_s14 = scalar_lea.vmem %s27_s13, 8192  ;;  %p637_p1 = scmp.lt.s32.totalorder %s27_s13, %s27_s13 }
   0x5   :  { %p633_p0 = scmp.ne.s32.totalorder %s27_s13, %s632_s14  ;;  %p638_p2 = scmp.lt.s32.totalorder %s632_s14, %s632_s14 }
   0x7   :  { %p639_p3 = por %p638_p2, %p637_p1 }
   0x9   :  { %p640_p4 = pnand %p639_p3, %p633_p0 }
   0xb   :  { %643 = shalt.err (!%p640_p4)
}
   0xc   :  { %s711_s15 = smov 128   ;;  %s712_s16 = smov 8  }
   0xd   :  { %32 = dma.hbm_to_vmem [thread:$0]  %s811_s1, 8192, %s27_s13, [#allocation6], %s711_s15, %s711_s15, %s712_s16  }
   0xe   :  { %s713_s19 = smov [#allocation2]   ;;  %s714_s21 = smov [#allocation7]  }
   0xf   :  { %s17_s20 = sshll.u32 %s713_s19, 4  ;;  %s38_s22 = sshll.u32 %s714_s21, 4  ;;  %s18_s20 = int_to_ptr.vmem [resolvable:$true] %s17_s20  ;;  %s39_s22 = int_to_ptr.vmem [resolvable:$true] %s38_s22 }
  0x10   :  { %s652_s23 = scalar_lea.vmem %s18_s20, 128  ;;  %p657_p6 = scmp.lt.s32.totalorder %s18_s20, %s18_s20 }
  0x11   :  { %p653_p5 = scmp.ne.s32.totalorder %s18_s20, %s652_s23  ;;  %p658_p7 = scmp.lt.s32.totalorder %s652_s23, %s652_s23 }
  0x13   :  { %p659_p8 = por %p658_p7, %p657_p6 }
  0x15   :  { %p660_p9 = pnand %p659_p8, %p653_p5 }
  0x17   :  { %663 = shalt.err (!%p660_p9)
}
  0x18   :  { %20 = dma.hbm_to_vmem [thread:$0]  %s810_s0, 128, %s18_s20, [#allocation3]  }
  0x19   :  { %s672_s26 = scalar_lea.vmem %s39_s22, 64  ;;  %p677_p11 = scmp.lt.s32.totalorder %s39_s22, %s39_s22 }
  0x1a   :  { %p673_p10 = scmp.ne.s32.totalorder %s39_s22, %s672_s26  ;;  %p678_p12 = scmp.lt.s32.totalorder %s672_s26, %s672_s26 }
  0x1c   :  { %p679_p13 = por %p678_p12, %p677_p11 }
  0x1e   :  { %p680_p0 = pnand %p679_p13, %p673_p10 }
  0x20   :  { %683 = shalt.err (!%p680_p0)
}
  0x21   :  { %s715_s1 = smov 16   ;;  %s716_s27 = smov 1  }
  0x22   :  { %44 = dma.hbm_to_vmem [thread:$0]  %s812_s2, 64, %s39_s22, [#allocation6], %s715_s1, %s715_s1, %s716_s27  }
  0x23   :  { %704 = dma.done.wait [#allocation3], 128  }
  0x24   :  { %705 = vsyncadd [#allocation3], 4294967168 }
  0x25   :  { %706 = dma.done.wait [#allocation6], 8256  }
  0x26   :  { %707 = vsyncadd [#allocation6], 4294959040  ;;  %v717_v0 = vmov 0.0   ;;  %vm718_vm0 = vmmov 0   ;;  %v55_v1 = vld [vmem:[#allocation5 + $0x8] sm:$0xff]  ;;  %v54_v2 = vld [vmem:[#allocation5] sm:$0xff] }
  0x27   :  { %502 = vmatprep.subr.mxu0 %v717_v0  ;;  %506 = vmatprep.mubr.msk.f32.mxu0 %vm718_vm0, %v717_v0  ;;  %v56_v3 = vld [vmem:[#allocation2] sm:$0xff]  ;;  %vm64_vm1 = vcmask 130048   ;;  %v154_v5 = vld [vmem:[#allocation5 + $0xf0] sm:$0xff]  ;;  %v153_v6 = vld [vmem:[#allocation5 + $0xe8] sm:$0xff]  ;;  %s719_s0 = smov [#allocation8]  }
  0x28   :  { %509 = vmatprep.subr.mxu1 %v717_v0  ;;  %541 = vmatprep.mubr.msk.f32.mxu1 %vm718_vm0, %v717_v0  ;;  %v155_v4 = vld [vmem:[#allocation5 + $0xf8] sm:$0xff]  ;;  %v152_v7 = vld [vmem:[#allocation5 + $0xe0] sm:$0xff]  ;;  %v150_v9 = vld [vmem:[#allocation5 + $0xd0] sm:$0xff]  ;;  %s433_s2 = sshll.u32 %s719_s0, 4  ;;  %s434_s2 = int_to_ptr.vmem [resolvable:$true] %s433_s2 }
  0x29   :  { %503 = vmatpush3.msra.mxu0 %v55_v1  ;;  %510 = vmatpush3.msra.mxu1 %v155_v4  ;;  %v151_v8 = vld [vmem:[#allocation5 + $0xd8] sm:$0xff]  ;;  %v149_v10 = vld [vmem:[#allocation5 + $0xc8] sm:$0xff]  ;;  %v148_v11 = vld [vmem:[#allocation5 + $0xc0] sm:$0xff]  ;;  %s684_s30 = scalar_lea.vmem %s434_s2, 128  ;;  %p689_p2 = scmp.lt.s32.totalorder %s434_s2, %s434_s2 }
  0x2a   :  { %504 = vmatprep.subr.mxu0 %v717_v0  ;;  %511 = vmatprep.subr.mxu1 %v717_v0  ;;  %v147_v12 = vld [vmem:[#allocation5 + $0xb8] sm:$0xff]  ;;  %v146_v13 = vld [vmem:[#allocation5 + $0xb0] sm:$0xff]  ;;  %v145_v14 = vld [vmem:[#allocation5 + $0xa8] sm:$0xff]  ;;  %p685_p1 = scmp.ne.s32.totalorder %s434_s2, %s684_s30  ;;  %p690_p3 = scmp.lt.s32.totalorder %s684_s30, %s684_s30 }
  0x2b   :  { %505 = vmatpush3.msra.mxu0 %v54_v2  ;;  %512 = vmatpush3.msra.mxu1 %v154_v5  ;;  %v144_v15 = vld [vmem:[#allocation5 + $0xa0] sm:$0xff]  ;;  %v143_v16 = vld [vmem:[#allocation5 + $0x98] sm:$0xff]  ;;  %v142_v17 = vld [vmem:[#allocation5 + $0x90] sm:$0xff] }
  0x2c   :  { %507 = vmatmul.mubr.msk.f32.vlgmr.msra.gmra.mxu0 %vm64_vm1, %v56_v3  ;;  %513 = vmatprep.subr.mxu1 %v717_v0  ;;  %v141_v18 = vld [vmem:[#allocation5 + $0x88] sm:$0xff]  ;;  %v140_v19 = vld [vmem:[#allocation5 + $0x80] sm:$0xff]  ;;  %v251_v20 = vld [vmem:[#allocation5 + $0x178] sm:$0xff]  ;;  %p691_p4 = por %p690_p3, %p689_p2 }
  0x2d   :  { %544 = vmatprep.subr.mxu0 %v717_v0  ;;  %514 = vmatpush3.msra.mxu1 %v153_v6  ;;  %v250_v21 = vld [vmem:[#allocation5 + $0x170] sm:$0xff]  ;;  %v249_v22 = vld [vmem:[#allocation5 + $0x168] sm:$0xff]  ;;  %v248_v23 = vld [vmem:[#allocation5 + $0x160] sm:$0xff] }
  0x2e   :  { %576 = vmatprep.mubr.msk.f32.mxu0 %vm718_vm0, %v717_v0  ;;  %515 = vmatprep.subr.mxu1 %v717_v0  ;;  %v247_v24 = vld [vmem:[#allocation5 + $0x158] sm:$0xff]  ;;  %v246_v25 = vld [vmem:[#allocation5 + $0x150] sm:$0xff]  ;;  %v245_v26 = vld [vmem:[#allocation5 + $0x148] sm:$0xff]  ;;  %p692_p5 = pnand %p691_p4, %p685_p1 }
  0x2f   :  { %516 = vmatpush3.msra.mxu1 %v152_v7  ;;  %545 = vmatpush3.msra.mxu0 %v251_v20  ;;  %v244_v27 = vld [vmem:[#allocation5 + $0x140] sm:$0xff]  ;;  %v243_v28 = vld [vmem:[#allocation5 + $0x138] sm:$0xff]  ;;  %v242_v29 = vld [vmem:[#allocation5 + $0x130] sm:$0xff] }
  0x30   :  { %517 = vmatprep.subr.mxu1 %v717_v0  ;;  %546 = vmatprep.subr.mxu0 %v717_v0  ;;  %v241_v30 = vld [vmem:[#allocation5 + $0x128] sm:$0xff]  ;;  %v240_v31 = vld [vmem:[#allocation5 + $0x120] sm:$0xff]  ;;  %v239_v32 = vld [vmem:[#allocation5 + $0x118] sm:$0xff] }
  0x31   :  { %518 = vmatpush3.msra.mxu1 %v151_v8  ;;  %547 = vmatpush3.msra.mxu0 %v250_v21  ;;  %v443_v33 = vld [vmem:[#allocation7] ss:$0 sm:$0xff]  ;;  %v238_v38 = vld [vmem:[#allocation5 + $0x110] sm:$0xff]  ;;  %v237_v39 = vld [vmem:[#allocation5 + $0x108] sm:$0xff] }
  0x32   :  { %519 = vmatprep.subr.mxu1 %v717_v0  ;;  %548 = vmatprep.subr.mxu0 %v717_v0  ;;  %v236_v40 = vld [vmem:[#allocation5 + $0x100] sm:$0xff]  ;;  %v347_v41 = vld [vmem:[#allocation5 + $0x1f8] sm:$0xff]  ;;  %v346_v42 = vld [vmem:[#allocation5 + $0x1f0] sm:$0xff] }
  0x33   :  { %520 = vmatpush3.msra.mxu1 %v150_v9  ;;  %549 = vmatpush3.msra.mxu0 %v249_v22  ;;  %v345_v43 = vld [vmem:[#allocation5 + $0x1e8] sm:$0xff]  ;;  %v344_v44 = vld [vmem:[#allocation5 + $0x1e0] sm:$0xff]  ;;  %v343_v45 = vld [vmem:[#allocation5 + $0x1d8] sm:$0xff] }
  0x34   :  { %521 = vmatprep.subr.mxu1 %v717_v0  ;;  %550 = vmatprep.subr.mxu0 %v717_v0  ;;  %v342_v46 = vld [vmem:[#allocation5 + $0x1d0] sm:$0xff]  ;;  %v341_v47 = vld [vmem:[#allocation5 + $0x1c8] sm:$0xff]  ;;  %v340_v48 = vld [vmem:[#allocation5 + $0x1c0] sm:$0xff] }
  0x35   :  { %522 = vmatpush3.msra.mxu1 %v149_v10  ;;  %551 = vmatpush3.msra.mxu0 %v248_v23  ;;  %v339_v49 = vld [vmem:[#allocation5 + $0x1b8] sm:$0xff]  ;;  %v338_v50 = vld [vmem:[#allocation5 + $0x1b0] sm:$0xff]  ;;  %v337_v51 = vld [vmem:[#allocation5 + $0x1a8] sm:$0xff] }
  0x36   :  { %523 = vmatprep.subr.mxu1 %v717_v0  ;;  %552 = vmatprep.subr.mxu0 %v717_v0  ;;  %v336_v52 = vld [vmem:[#allocation5 + $0x1a0] sm:$0xff]  ;;  %v335_v53 = vld [vmem:[#allocation5 + $0x198] sm:$0xff]  ;;  %v334_v59 = vld [vmem:[#allocation5 + $0x190] sm:$0xff] }
  0x37   :  { %524 = vmatpush3.msra.mxu1 %v148_v11  ;;  %553 = vmatpush3.msra.mxu0 %v247_v24  ;;  %v445_v54 = vld [vmem:[#allocation7 + $0x1] ss:$0 sm:$0xff]  ;;  %v333_v60 = vld [vmem:[#allocation5 + $0x188] sm:$0xff]  ;;  %v446_v62 = vld [vmem:[#allocation7 + $0x2] ss:$0 sm:$0xff] }
  0x38   :  { %525 = vmatprep.subr.mxu1 %v717_v0  ;;  %554 = vmatprep.subr.mxu0 %v717_v0  ;;  %v332_v61 = vld [vmem:[#allocation5 + $0x180] sm:$0xff] }
  0x39   :  { %526 = vmatpush3.msra.mxu1 %v147_v12  ;;  %555 = vmatpush3.msra.mxu0 %v246_v25  ;;  %v447_v4 = vld [vmem:[#allocation7 + $0x3] ss:$0 sm:$0xff] }
  0x3a   :  { %527 = vmatprep.subr.mxu1 %v717_v0  ;;  %556 = vmatprep.subr.mxu0 %v717_v0 }
  0x3b   :  { %528 = vmatpush3.msra.mxu1 %v146_v13  ;;  %557 = vmatpush3.msra.mxu0 %v245_v26 }
  0x3c   :  { %529 = vmatprep.subr.mxu1 %v717_v0  ;;  %558 = vmatprep.subr.mxu0 %v717_v0 }
  0x3d   :  { %530 = vmatpush3.msra.mxu1 %v145_v14  ;;  %559 = vmatpush3.msra.mxu0 %v244_v27 }
  0x3e   :  { %531 = vmatprep.subr.mxu1 %v717_v0  ;;  %560 = vmatprep.subr.mxu0 %v717_v0 }
  0x3f   :  { %532 = vmatpush3.msra.mxu1 %v144_v15  ;;  %561 = vmatpush3.msra.mxu0 %v243_v28 }
  0x40   :  { %533 = vmatprep.subr.mxu1 %v717_v0  ;;  %562 = vmatprep.subr.mxu0 %v717_v0 }
  0x41   :  { %534 = vmatpush3.msra.mxu1 %v143_v16  ;;  %563 = vmatpush3.msra.mxu0 %v242_v29 }
  0x42   :  { %535 = vmatprep.subr.mxu1 %v717_v0  ;;  %564 = vmatprep.subr.mxu0 %v717_v0 }
  0x43   :  { %536 = vmatpush3.msra.mxu1 %v142_v17  ;;  %565 = vmatpush3.msra.mxu0 %v241_v30 }
  0x44   :  { %537 = vmatprep.subr.mxu1 %v717_v0  ;;  %566 = vmatprep.subr.mxu0 %v717_v0 }
  0x45   :  { %538 = vmatpush3.msra.mxu1 %v141_v18  ;;  %567 = vmatpush3.msra.mxu0 %v240_v31 }
  0x46   :  { %539 = vmatprep.subr.mxu1 %v717_v0  ;;  %568 = vmatprep.subr.mxu0 %v717_v0 }
  0x47   :  { %540 = vmatpush3.msra.mxu1 %v140_v19  ;;  %569 = vmatpush3.msra.mxu0 %v239_v32 }
  0x48   :  { %579 = vmatprep.subr.mxu1 %v717_v0  ;;  %570 = vmatprep.subr.mxu0 %v717_v0 }
  0x49   :  { %571 = vmatpush3.msra.mxu0 %v238_v38 }
  0x4a   :  { %572 = vmatprep.subr.mxu0 %v717_v0 }
  0x4b   :  { %573 = vmatpush3.msra.mxu0 %v237_v39 }
  0x4c   :  { %574 = vmatprep.subr.mxu0 %v717_v0 }
  0x4d   :  { %575 = vmatpush3.msra.mxu0 %v236_v40 }
  0xec   :  { %v134_v34 = vpop.f32.mrf.mxu0 }
  0xed   :  { %v135_v35 = vadd.f32 %v443_v33, %v134_v34 }
  0xee   :  { %v508_v36 = vpop.f32.mrf.mxu0 }
  0xef   :  { %v138_v37 = vmax.f32 %v135_v35, 0.0 }
  0xf1   :  { %542 = vmatmul.mubr.f32.vlgmr.msra.gmra.mxu1 %v138_v37 }
  0xf2   :  { %611 = vmatprep.mubr.msk.f32.mxu1 %vm718_vm0, %v717_v0  ;;  %580 = vmatpush3.msra.mxu1 %v347_v41 }
  0xf3   :  { %581 = vmatprep.subr.mxu1 %v717_v0 }
  0xf4   :  { %582 = vmatpush3.msra.mxu1 %v346_v42 }
  0xf5   :  { %583 = vmatprep.subr.mxu1 %v717_v0 }
  0xf6   :  { %584 = vmatpush3.msra.mxu1 %v345_v43 }
  0xf7   :  { %585 = vmatprep.subr.mxu1 %v717_v0 }
  0xf8   :  { %586 = vmatpush3.msra.mxu1 %v344_v44 }
  0xf9   :  { %587 = vmatprep.subr.mxu1 %v717_v0 }
  0xfa   :  { %588 = vmatpush3.msra.mxu1 %v343_v45 }
  0xfb   :  { %589 = vmatprep.subr.mxu1 %v717_v0 }
  0xfc   :  { %590 = vmatpush3.msra.mxu1 %v342_v46 }
  0xfd   :  { %591 = vmatprep.subr.mxu1 %v717_v0 }
  0xfe   :  { %592 = vmatpush3.msra.mxu1 %v341_v47 }
  0xff   :  { %593 = vmatprep.subr.mxu1 %v717_v0 }
 0x100   :  { %594 = vmatpush3.msra.mxu1 %v340_v48 }
 0x101   :  { %595 = vmatprep.subr.mxu1 %v717_v0 }
 0x102   :  { %596 = vmatpush3.msra.mxu1 %v339_v49 }
 0x103   :  { %597 = vmatprep.subr.mxu1 %v717_v0 }
 0x104   :  { %598 = vmatpush3.msra.mxu1 %v338_v50 }
 0x105   :  { %599 = vmatprep.subr.mxu1 %v717_v0 }
 0x106   :  { %600 = vmatpush3.msra.mxu1 %v337_v51 }
 0x107   :  { %601 = vmatprep.subr.mxu1 %v717_v0 }
 0x108   :  { %602 = vmatpush3.msra.mxu1 %v336_v52 }
 0x109   :  { %603 = vmatprep.subr.mxu1 %v717_v0 }
 0x10a   :  { %604 = vmatpush3.msra.mxu1 %v335_v53 }
 0x10b   :  { %605 = vmatprep.subr.mxu1 %v717_v0 }
 0x10c   :  { %606 = vmatpush3.msra.mxu1 %v334_v59 }
 0x10d   :  { %607 = vmatprep.subr.mxu1 %v717_v0 }
 0x10e   :  { %608 = vmatpush3.msra.mxu1 %v333_v60 }
 0x10f   :  { %609 = vmatprep.subr.mxu1 %v717_v0 }
 0x110   :  { %610 = vmatpush3.msra.mxu1 %v332_v61 }
 0x1b1   :  { %v230_v55 = vpop.f32.mrf.mxu1 }
 0x1b2   :  { %v231_v56 = vadd.f32 %v445_v54, %v230_v55 }
 0x1b3   :  { %v543_v57 = vpop.f32.mrf.mxu1 }
 0x1b4   :  { %v234_v58 = vmax.f32 %v231_v56, 0.0 }
 0x1b6   :  { %577 = vmatmul.mubr.f32.vlgmr.msra.gmra.mxu0 %v234_v58 }
 0x276   :  { %v326_v63 = vpop.f32.mrf.mxu0 }
 0x277   :  { %v327_v1 = vadd.f32 %v446_v62, %v326_v63 }
 0x278   :  { %v578_v2 = vpop.f32.mrf.mxu0 }
 0x279   :  { %v330_v3 = vmax.f32 %v327_v1, 0.0 }
 0x27b   :  { %612 = vmatmul.mubr.f32.vlgmr.msra.gmra.mxu1 %v330_v3 }
 0x33b   :  { %v422_v5 = vpop.f32.mrf.mxu1 }
 0x33c   :  { %v423_v6 = vadd.f32 %v447_v4, %v422_v5 }
 0x33d   :  { %v613_v7 = vpop.f32.mrf.mxu1 }
 0x33e   :  { %426 = vst [vmem:[#allocation8] sm:$0xff] %v423_v6 }
 0x33f   :  { %695 = shalt.err (!%p692_p5)
}
 0x340   :  { %436 = dma.vmem_to_hbm [thread:$0]  %s434_s2, 128, %s813_s3, [#allocation4]  }
 0x341   :  { %708 = dma.done.wait [#allocation4], 128  }
 0x342   :  { %709 = vsyncadd [#allocation4], 4294967168 }
 0x343   :  { %440 = vsyncpa [#allocation3], 1 }
 0x344   :  { %441 = vsyncpa [#allocation6], 1 }
 0x345   :  { %442 = vsyncpa [#allocation4], 1 }

</bundles_post_ra>
